<compile_context>
chip_gen: v5e
topology: v5e:2x2
jax: 0.10.0
libtpu: 0.0.40
codegen_flags: <defaults>
</compile_context>

<pallas_src>
import jax
import jax.numpy as jnp
from jax import lax
from jax.experimental import pallas as pl
from jax.experimental.pallas import tpu as pltpu

K = 3  # kernel size == stride (nn.MaxPool2d default stride = kernel_size), padding = 0


def _maxpool_kernel(x_ref, o_ref):
    # x_ref: (nct, H, W)   o_ref: (nct, OH, OW)
    nct, H, W = x_ref.shape
    _, OH, OW = o_ref.shape

    x = x_ref[...].astype(jnp.float32)  # (nct, H, W)

    # One-hot selectors built from 2-D iotas (TPU needs >= 2-D iota):
    #   sel_rows(d)[n, i, h] = 1.0 iff h == K*i + d   (picks window row d)
    #   sel_cols(d)[n, w, j] = 1.0 iff w == K*j + d   (picks window col d)
    hi = lax.broadcasted_iota(jnp.int32, (OH, H), 1)
    oi = lax.broadcasted_iota(jnp.int32, (OH, H), 0)
    wj = lax.broadcasted_iota(jnp.int32, (W, OW), 0)
    oj = lax.broadcasted_iota(jnp.int32, (W, OW), 1)

    def sel_rows(d):
        s = (hi == K * oi + d).astype(jnp.float32)          # (OH, H)
        return jnp.broadcast_to(s[None], (nct, OH, H))

    def sel_cols(d):
        s = (wj == K * oj + d).astype(jnp.float32)          # (W, OW)
        return jnp.broadcast_to(s[None], (nct, W, OW))

    # Pool along H:  r[n, i, w] = max_d x[n, K*i + d, w]
    # Each einsum is an exact one-hot row copy (assumes finite inputs, as for images).
    rows = [jnp.einsum('nih,nhw->niw', sel_rows(d), x,
                       preferred_element_type=jnp.float32) for d in range(K)]
    r = jnp.maximum(jnp.maximum(rows[0], rows[1]), rows[2])  # (nct, OH, W)

    # Pool along W:  out[n, i, j] = max_d r[n, i, K*j + d]
    cols = [jnp.einsum('niw,nwj->nij', r, sel_cols(d),
                       preferred_element_type=jnp.float32) for d in range(K)]
    out = jnp.maximum(jnp.maximum(cols[0], cols[1]), cols[2])  # (nct, OH, OW)

    o_ref[...] = out.astype(o_ref.dtype)                      # single wide store


def _pick_nc_tile(NC, H, W, itemsize, budget_bytes=4 << 20):
    """Largest divisor of NC whose (tile, H, W) input block fits the per-block budget,
    preferring tilings that keep >= 2 grid steps (so both v7x TensorCores get work)."""
    divisors = [d for d in range(1, NC + 1) if NC % d == 0]
    fits = [d for d in divisors if d * H * W * itemsize <= budget_bytes] or [1]
    multi = [d for d in fits if NC // d >= 2]
    return max(multi) if multi else max(fits)


def maxpool2d_pallas(x_nchw):
    """nn.MaxPool2d(kernel_size=3, ceil_mode=False) on an NCHW tensor (floor mode)."""
    N, C, H, W = x_nchw.shape
    OH = (H - K) // K + 1
    OW = (W - K) // K + 1
    assert OH >= 1 and OW >= 1, "input smaller than the pooling window"
    NC = N * C

    x = x_nchw.reshape(NC, H, W)          # contiguous reshape: no transpose, no copy
    itemsize = x.dtype.itemsize
    nc_tile = _pick_nc_tile(NC, H, W, itemsize)
    grid = (NC // nc_tile,)

    cost = pl.CostEstimate(
        flops=(K * K - 1) * NC * OH * OW,
        transcendentals=0,
        bytes_accessed=x.size * itemsize + NC * OH * OW * itemsize,
    )

    out = pl.pallas_call(
        _maxpool_kernel,
        out_shape=jax.ShapeDtypeStruct((NC, OH, OW), x.dtype),
        grid_spec=pltpu.PrefetchScalarGridSpec(
            num_scalar_prefetch=0,
            grid=grid,
            # Last two block dims equal the full array dims -> (8,128) rule satisfied.
            in_specs=[pl.BlockSpec((nc_tile, H, W), lambda i: (i, 0, 0))],
            out_specs=pl.BlockSpec((nc_tile, OH, OW), lambda i: (i, 0, 0)),
        ),
        compiler_params=pltpu.CompilerParams(
            dimension_semantics=("parallel",),
        ),
        cost_estimate=cost,
    )(x)

    return out.reshape(N, C, OH, OW)


if __name__ == "__main__":
    key = jax.random.PRNGKey(0)
    x = jax.random.normal(key, (2, 4, 16, 16), dtype=jnp.float32)  # NCHW

    out = maxpool2d_pallas(x)
    jax.block_until_ready(out)

    # Reference: same semantics as torch MaxPool2d(kernel_size=3), floor mode.
    ref = lax.reduce_window(
        x, -jnp.inf, lax.max,
        window_dimensions=(1, 1, K, K),
        window_strides=(1, 1, K, K),
        padding="VALID",
    )
    assert out.shape == (2, 4, 5, 5), out.shape
    assert jnp.allclose(out, ref), "mismatch vs reference"

    print("KERNEL_OK")
</pallas_src>

<mosaic_0001>
module attributes {stable_mosaic.version = 11 : i64} {
  func.func @_maxpool_kernel(%arg0: i32, %arg1: memref<4x16x16xf32, #tpu.memory_space<vmem>>, %arg2: memref<4x5x5xf32, #tpu.memory_space<vmem>>) attributes {dimension_semantics = [#tpu.dimension_semantics<parallel>], iteration_bounds = array<i64: 2>, scalar_prefetch = 0 : i64, scratch_operands = 0 : i64, tpu.core_type = #tpu.core_type<tc>, window_params = [{transform_indices = @transform_0, window_bounds = array<i64: 4, 16, 16>}, {transform_indices = @transform_1, window_bounds = array<i64: 4, 5, 5>}]} {
    %c0 = arith.constant 0 : index
    %c0_0 = arith.constant 0 : index
    %c0_1 = arith.constant 0 : index
    %0 = vector.load %arg1[%c0, %c0_0, %c0_1] : memref<4x16x16xf32, #tpu.memory_space<vmem>>, vector<4x16x16xf32>
    %1 = tpu.iota {dimensions = array<i32: 1>} : vector<5x16xi32>
    %2 = tpu.iota {dimensions = array<i32: 0>} : vector<5x16xi32>
    %3 = tpu.iota {dimensions = array<i32: 0>} : vector<16x5xi32>
    %4 = tpu.iota {dimensions = array<i32: 1>} : vector<16x5xi32>
    %c3_i32 = arith.constant 3 : i32
    %5 = vector.broadcast %c3_i32 : i32 to vector<5x16xi32>
    %6 = arith.muli %5, %2 : vector<5x16xi32>
    %c0_i32 = arith.constant 0 : i32
    %7 = vector.broadcast %c0_i32 : i32 to vector<5x16xi32>
    %8 = arith.addi %6, %7 : vector<5x16xi32>
    %9 = arith.cmpi eq, %1, %8 : vector<5x16xi32>
    %10 = arith.extui %9 : vector<5x16xi1> to vector<5x16xi32>
    %11 = arith.sitofp %10 : vector<5x16xi32> to vector<5x16xf32>
    %12 = vector.shape_cast %11 : vector<5x16xf32> to vector<1x5x16xf32>
    %13 = vector.shape_cast %12 : vector<1x5x16xf32> to vector<1x5x16xf32>
    %14 = vector.broadcast %13 : vector<1x5x16xf32> to vector<4x5x16xf32>
    "tpu.trace_start"() <{level = 10 : i32, message = "nih,nhw->niw"}> : () -> ()
    %cst = arith.constant dense<0.000000e+00> : vector<4x5x16xf32>
    %15 = tpu.matmul %14, %0, %cst {dimension_numbers = #tpu.dot_dimension_numbers<[2], [1], [1], [2], [0, 0, 0, 1, 1, 2], [0], [0]>} : vector<4x5x16xf32>, vector<4x16x16xf32>, vector<4x5x16xf32> -> vector<4x5x16xf32>
    "tpu.trace_stop"() : () -> ()
    %c3_i32_2 = arith.constant 3 : i32
    %16 = vector.broadcast %c3_i32_2 : i32 to vector<5x16xi32>
    %17 = arith.muli %16, %2 : vector<5x16xi32>
    %c1_i32 = arith.constant 1 : i32
    %18 = vector.broadcast %c1_i32 : i32 to vector<5x16xi32>
    %19 = arith.addi %17, %18 : vector<5x16xi32>
    %20 = arith.cmpi eq, %1, %19 : vector<5x16xi32>
    %21 = arith.extui %20 : vector<5x16xi1> to vector<5x16xi32>
    %22 = arith.sitofp %21 : vector<5x16xi32> to vector<5x16xf32>
    %23 = vector.shape_cast %22 : vector<5x16xf32> to vector<1x5x16xf32>
    %24 = vector.shape_cast %23 : vector<1x5x16xf32> to vector<1x5x16xf32>
    %25 = vector.broadcast %24 : vector<1x5x16xf32> to vector<4x5x16xf32>
    "tpu.trace_start"() <{level = 10 : i32, message = "nih,nhw->niw"}> : () -> ()
    %cst_3 = arith.constant dense<0.000000e+00> : vector<4x5x16xf32>
    %26 = tpu.matmul %25, %0, %cst_3 {dimension_numbers = #tpu.dot_dimension_numbers<[2], [1], [1], [2], [0, 0, 0, 1, 1, 2], [0], [0]>} : vector<4x5x16xf32>, vector<4x16x16xf32>, vector<4x5x16xf32> -> vector<4x5x16xf32>
    "tpu.trace_stop"() : () -> ()
    %c3_i32_4 = arith.constant 3 : i32
    %27 = vector.broadcast %c3_i32_4 : i32 to vector<5x16xi32>
    %28 = arith.muli %27, %2 : vector<5x16xi32>
    %c2_i32 = arith.constant 2 : i32
    %29 = vector.broadcast %c2_i32 : i32 to vector<5x16xi32>
    %30 = arith.addi %28, %29 : vector<5x16xi32>
    %31 = arith.cmpi eq, %1, %30 : vector<5x16xi32>
    %32 = arith.extui %31 : vector<5x16xi1> to vector<5x16xi32>
    %33 = arith.sitofp %32 : vector<5x16xi32> to vector<5x16xf32>
    %34 = vector.shape_cast %33 : vector<5x16xf32> to vector<1x5x16xf32>
    %35 = vector.shape_cast %34 : vector<1x5x16xf32> to vector<1x5x16xf32>
    %36 = vector.broadcast %35 : vector<1x5x16xf32> to vector<4x5x16xf32>
    "tpu.trace_start"() <{level = 10 : i32, message = "nih,nhw->niw"}> : () -> ()
    %cst_5 = arith.constant dense<0.000000e+00> : vector<4x5x16xf32>
    %37 = tpu.matmul %36, %0, %cst_5 {dimension_numbers = #tpu.dot_dimension_numbers<[2], [1], [1], [2], [0, 0, 0, 1, 1, 2], [0], [0]>} : vector<4x5x16xf32>, vector<4x16x16xf32>, vector<4x5x16xf32> -> vector<4x5x16xf32>
    "tpu.trace_stop"() : () -> ()
    %38 = arith.maximumf %15, %26 : vector<4x5x16xf32>
    %39 = arith.maximumf %38, %37 : vector<4x5x16xf32>
    %c3_i32_6 = arith.constant 3 : i32
    %40 = vector.broadcast %c3_i32_6 : i32 to vector<16x5xi32>
    %41 = arith.muli %40, %4 : vector<16x5xi32>
    %c0_i32_7 = arith.constant 0 : i32
    %42 = vector.broadcast %c0_i32_7 : i32 to vector<16x5xi32>
    %43 = arith.addi %41, %42 : vector<16x5xi32>
    %44 = arith.cmpi eq, %3, %43 : vector<16x5xi32>
    %45 = arith.extui %44 : vector<16x5xi1> to vector<16x5xi32>
    %46 = arith.sitofp %45 : vector<16x5xi32> to vector<16x5xf32>
    %47 = vector.shape_cast %46 : vector<16x5xf32> to vector<1x16x5xf32>
    %48 = vector.shape_cast %47 : vector<1x16x5xf32> to vector<1x16x5xf32>
    %49 = vector.broadcast %48 : vector<1x16x5xf32> to vector<4x16x5xf32>
    "tpu.trace_start"() <{level = 10 : i32, message = "niw,nwj->nij"}> : () -> ()
    %cst_8 = arith.constant dense<0.000000e+00> : vector<4x5x5xf32>
    %50 = tpu.matmul %39, %49, %cst_8 {dimension_numbers = #tpu.dot_dimension_numbers<[2], [1], [1], [2], [0, 0, 0, 1, 1, 2], [0], [0]>} : vector<4x5x16xf32>, vector<4x16x5xf32>, vector<4x5x5xf32> -> vector<4x5x5xf32>
    "tpu.trace_stop"() : () -> ()
    %c3_i32_9 = arith.constant 3 : i32
    %51 = vector.broadcast %c3_i32_9 : i32 to vector<16x5xi32>
    %52 = arith.muli %51, %4 : vector<16x5xi32>
    %c1_i32_10 = arith.constant 1 : i32
    %53 = vector.broadcast %c1_i32_10 : i32 to vector<16x5xi32>
    %54 = arith.addi %52, %53 : vector<16x5xi32>
    %55 = arith.cmpi eq, %3, %54 : vector<16x5xi32>
    %56 = arith.extui %55 : vector<16x5xi1> to vector<16x5xi32>
    %57 = arith.sitofp %56 : vector<16x5xi32> to vector<16x5xf32>
    %58 = vector.shape_cast %57 : vector<16x5xf32> to vector<1x16x5xf32>
    %59 = vector.shape_cast %58 : vector<1x16x5xf32> to vector<1x16x5xf32>
    %60 = vector.broadcast %59 : vector<1x16x5xf32> to vector<4x16x5xf32>
    "tpu.trace_start"() <{level = 10 : i32, message = "niw,nwj->nij"}> : () -> ()
    %cst_11 = arith.constant dense<0.000000e+00> : vector<4x5x5xf32>
    %61 = tpu.matmul %39, %60, %cst_11 {dimension_numbers = #tpu.dot_dimension_numbers<[2], [1], [1], [2], [0, 0, 0, 1, 1, 2], [0], [0]>} : vector<4x5x16xf32>, vector<4x16x5xf32>, vector<4x5x5xf32> -> vector<4x5x5xf32>
    "tpu.trace_stop"() : () -> ()
    %c3_i32_12 = arith.constant 3 : i32
    %62 = vector.broadcast %c3_i32_12 : i32 to vector<16x5xi32>
    %63 = arith.muli %62, %4 : vector<16x5xi32>
    %c2_i32_13 = arith.constant 2 : i32
    %64 = vector.broadcast %c2_i32_13 : i32 to vector<16x5xi32>
    %65 = arith.addi %63, %64 : vector<16x5xi32>
    %66 = arith.cmpi eq, %3, %65 : vector<16x5xi32>
    %67 = arith.extui %66 : vector<16x5xi1> to vector<16x5xi32>
    %68 = arith.sitofp %67 : vector<16x5xi32> to vector<16x5xf32>
    %69 = vector.shape_cast %68 : vector<16x5xf32> to vector<1x16x5xf32>
    %70 = vector.shape_cast %69 : vector<1x16x5xf32> to vector<1x16x5xf32>
    %71 = vector.broadcast %70 : vector<1x16x5xf32> to vector<4x16x5xf32>
    "tpu.trace_start"() <{level = 10 : i32, message = "niw,nwj->nij"}> : () -> ()
    %cst_14 = arith.constant dense<0.000000e+00> : vector<4x5x5xf32>
    %72 = tpu.matmul %39, %71, %cst_14 {dimension_numbers = #tpu.dot_dimension_numbers<[2], [1], [1], [2], [0, 0, 0, 1, 1, 2], [0], [0]>} : vector<4x5x16xf32>, vector<4x16x5xf32>, vector<4x5x5xf32> -> vector<4x5x5xf32>
    "tpu.trace_stop"() : () -> ()
    %73 = arith.maximumf %50, %61 : vector<4x5x5xf32>
    %74 = arith.maximumf %73, %72 : vector<4x5x5xf32>
    %c0_15 = arith.constant 0 : index
    %c0_16 = arith.constant 0 : index
    %c0_17 = arith.constant 0 : index
    %75 = vector.load %arg2[%c0_15, %c0_16, %c0_17] : memref<4x5x5xf32, #tpu.memory_space<vmem>>, vector<4x5x5xf32>
    tpu.vector_store %arg2[%c0_15, %c0_16, %c0_17], %74 {strides = array<i32>} : memref<4x5x5xf32, #tpu.memory_space<vmem>>, vector<4x5x5xf32>,
    return
  }
  func.func @transform_0(%arg0: i32) -> (i32, i32, i32) {
    %c0_i32 = arith.constant 0 : i32
    %c0_i32_0 = arith.constant 0 : i32
    %c0_i32_1 = arith.constant 0 : i32
    return %arg0, %c0_i32, %c0_i32_0 : i32, i32, i32
  }
  func.func @transform_1(%arg0: i32) -> (i32, i32, i32) {
    %c0_i32 = arith.constant 0 : i32
    %c0_i32_0 = arith.constant 0 : i32
    %c0_i32_1 = arith.constant 0 : i32
    return %arg0, %c0_i32, %c0_i32_0 : i32, i32, i32
  }
}

</mosaic_0001>

<bundles_post_ra>
// kernel: tpu_custom_call.1
= control target key start
LH: loop header
LB: loop body
LE: loop exit
PB: predicated region body
PF: predicated region fallthrough
CT: control target
= control target key end

     0   :  { %6 = vsyncpa [#allocation3], 0  ;;  %s1108_s0 = inlined_call_operand.hbm [shape: f32[8,16,16], index: 0, kind: input, shape index: {}]   ;;  %s1109_s1 = inlined_call_operand.vmem [shape: f32[8,5,5], index: 1, kind: output, shape index: {}]  }
   0x1   :  { %8 = vsyncpa [#allocation3 + $0x1], 0  ;;  %s974_s6 = smov 0   ;;  %s976_s7 = smov 0  }
   0x2   :  { %s978_s8 = smov 0   ;;  %s980_s9 = smov 0  }
   0x3 LB: > { %s778_s10 = sadd.s32 4294967295, %s958_s9   ;;  %s994_s11 = sadd.s32 1, %s958_s9   ;;  %s958_s9 = sphi %s980_s9, %s1116_s9   ;;  %s954_s8 = sphi %s978_s8, %s1115_s8   ;;  %s950_s7 = sphi %s976_s7, %s1114_s7   ;;  %s946_s6 = sphi %s974_s6, %s1113_s6  }
   0x4   : > { %s18_s12 = ssub.s32 %s958_s9, %s994_s11  ;;  %s21_s13 = sadd.s32 1, %s954_s8 }
   0x5   : > { %p19_p0 = scmp.eq.s32.totalorder %s18_s12, 0  ;;  %p28_p1 = scmp.ne.s32.totalorder %s954_s8, %s950_s7 }
   0x6   : > { %p29_p2 = scmp.eq.s32.totalorder %s958_s9, 0  ;;  %p34_p3 = scmp.ne.s32.totalorder %s950_s7, %s946_s6 }
   0x7   : > { %s1004_s14 = scalar_select %p19_p0, %s954_s8, %s21_s13  }
   0x8   : > { %p1006_p4 = por %p29_p2, %p28_p1  ;;  %p35_p5 = scmp.eq.s32.totalorder %s778_s10, 0 }
   0x9   : > { %p857_p6 = scmp.lt.s32.totalorder %s958_s9, 2  ;;  %s84_s17 = sand.u32 1, %s954_s8  }
   0xa   : > { %p1013_p7 = por %p35_p5, %p34_p3  ;;  %s782_s18 = sshll.u32 %s84_s17, 6 }
   0xb   : > { %s850_s19 = sshll.u32 %s958_s9, 6  ;;  %s88_s23 = scalar_lea.vmem [#allocation2], %s782_s18 }
   0xc   : > { %s94_s22 = scalar_lea.hbm %s1108_s0, %s850_s19  ;;  %s97_s24 = sshll.u32 %s88_s23, 4  ;;  %s98_s24 = int_to_ptr.vmem [resolvable:$true] %s97_s24 }
   0xd   : > { %s95_s25 = sshll.u32 %s94_s22, 4  ;;  %p1024_p8 = pnand %p857_p6, %p1006_p4  ;;  %s96_s25 = int_to_ptr.hbm [resolvable:$true] %s95_s25 }
   0xe   : > { %p786_p9 = scmp.ge.s32.totalorder %s958_s9, 1  ;;  %s85_s27 = scalar_lea.sflag [#allocation3], %s84_s17 }
   0xf   : > { %s894_s28 = sshra.s32 %s96_s25, 4  ;;  %p898_p11 = pneg %p1024_p8  ;;  %s895_s28 = int_to_ptr.hbm [resolvable:$true] %s894_s28 }
  0x10   : > { %s896_s29 = scalar_lea.hbm %s895_s28, 64  ;;  %s901_s3 = scalar_lea.hbm %s1108_s0, 128 }
  0x11   : > { %p897_p10 = scmp.ne.s32.totalorder %s895_s28, %s896_s29  ;;  %p902_p0 = scmp.lt.s32.totalorder %s895_s28, %s1108_s0 }
  0x12   : > { %p903_p1 = scmp.lt.s32.totalorder %s901_s3, %s896_s29 }
  0x13   : > { %p899_p12 = pnand %p898_p11, %p897_p10 }
  0x14   : > { %p904_p2 = por %p903_p1, %p902_p0 }
  0x15   : > { %p900_p13 = pneg %p899_p12 }
  0x17   : > { %p905_p3 = pnand %p904_p2, %p900_p13 }
  0x19   : > { %908 = shalt.err (!%p905_p3)
}
  0x1a   : > { %s960_s6 = smov 128   ;;  %s961_s12 = smov 8  }
  0x1b   : > { %856 = dma.hbm_to_vmem [thread:$0]  (!%p1024_p8), %s96_s25, 1024, %s98_s24, %s85_s27, %s960_s6, %s960_s6, %s961_s12  }
  0x1c   : > { %p105_p4 = scmp.lt.s32.totalorder %s958_s9, 3 }
  0x1e   : > { %p106_p5 = pnand %p786_p9, %p105_p4 }
  0x1f   : > { %s111_s13 = sand.u32 (!%p106_p5), 1, %s950_s7  }
  0x20   : > { %109 = sbr.rel (%p106_p5) target bundleno = 349 (0x15d), region = 24  ;;  %s787_s15 = sshll.u32 (!%p106_p5), %s111_s13, 6 }
  0x21   : > { %s112_s17 = scalar_lea.sflag (!%p106_p5), [#allocation3], %s111_s13  ;;  %s115_s18 = scalar_lea.vmem (!%p106_p5), [#allocation2], %s787_s15 }
  0x25   : > { %941 = dma.done.wait (%p1013_p7), %s112_s17, 1024  }
  0x26   : > { %943 = vsyncadd (%p1013_p7), %s112_s17, 4294966272  ;;  %v150_v0 = vlaneseq  ;;  %v143_v4 = vld [vmem:[%s115_s18 + $0x8] sm:$0xff]  ;;  %v145_v5 = vld [vmem:[%s115_s18 + $0x18] sm:$0xff]  ;;  %v962_v12 = vmov 0.0   ;;  %vm159_vm1 = vcmask 130048   ;;  %v963_v20 = vmov 1.0  }
  0x27   : > { %v147_v6 = vld [vmem:[%s115_s18 + $0x28] sm:$0xff]  ;;  %177 = vmatpush.msra.mxu0 %v143_v4  ;;  %197 = vmatpush.msra.mxu1 %v145_v5  ;;  %v149_v7 = vld [vmem:[%s115_s18 + $0x38] sm:$0xff]  ;;  %v142_v8 = vld [vmem:[%s115_s18] sm:$0xff]  ;;  %s788_s16 = sshll.u32 %s778_s10, 2  ;;  %vm706_vm10 = vcmask 36864  }
  0x28   : > { %v151_v1 = vand.u32 127, %v150_v0  ;;  %v1047_v2 = vshrl.u32 %v150_v0, 7  ;;  %v144_v9 = vld [vmem:[%s115_s18 + $0x10] sm:$0xff]  ;;  %217 = vmatpush.msra.mxu2 %v147_v6  ;;  %237 = vmatpush.msra.mxu3 %v149_v7  ;;  %v146_v10 = vld [vmem:[%s115_s18 + $0x20] sm:$0xff]  ;;  %p137_p6 = scmp.lt.s32.totalorder %s788_s16, 7 }
  0x29   : > { %v148_v11 = vld [vmem:[%s115_s18 + $0x30] sm:$0xff]  ;;  %178 = vmatpush.msra.mxu0 %v142_v8  ;;  %198 = vmatpush.msra.mxu1 %v144_v9 }
  0x2a   : > { %v155_v3 = vmul.u32 3, %v1047_v2  ;;  %218 = vmatpush.msra.mxu2 %v146_v10  ;;  %238 = vmatpush.msra.mxu3 %v148_v11  ;;  %v154_v18 = vadd.s32 8, %v1047_v2  ;;  %v425_v19 = vmul.u32 3, %v151_v1  ;;  %s1118_s16 = smov (!%p137_p6, %s788_s16), 7 }
  0x2b   : > { %264 = vmatpush.msrb.mxu0 %v143_v4  ;;  %284 = vmatpush.msrb.mxu1 %v145_v5  ;;  %s789_s19 = sshll.u32 %s1118_s16, 3 }
  0x2c   : > { %vm156_vm0 = vcmp.eq.s32.totalorder %v151_v1, %v155_v3  ;;  %v243_v14 = vadd.s32 1, %v155_v3  ;;  %304 = vmatpush.msrb.mxu2 %v147_v6  ;;  %324 = vmatpush.msrb.mxu3 %v149_v7  ;;  %v330_v16 = vadd.s32 2, %v155_v3  ;;  %vm427_vm4 = vcmp.eq.s32.totalorder %v154_v18, %v425_v19  ;;  %s140_s22 = scalar_lea.vmem %s1109_s1, %s789_s19 }
  0x2d   : > { %v790_v13 = vsel %vm156_vm0, 1.0, %v962_v12  ;;  %265 = vmatpush.msrb.mxu0 %v142_v8  ;;  %285 = vmatpush.msrb.mxu1 %v144_v9  ;;  %vm426_vm5 = vcmp.eq.s32.totalorder %v1047_v2, %v425_v19  ;;  %v524_v21 = vadd.s32 1, %v425_v19  ;;  %v611_v28 = vadd.s32 2, %v425_v19 }
  0x2e   : > { %791 = vmatmul.msk.f32.vlgmr.msra.gmra.mxu0 %vm159_vm1, %v790_v13  ;;  %792 = vmatmul.msk.f32.vlgmr.msra.gmra.mxu1 %vm159_vm1, %v790_v13  ;;  %vm244_vm2 = vcmp.eq.s32.totalorder %v151_v1, %v243_v14  ;;  %vm331_vm3 = vcmp.eq.s32.totalorder %v151_v1, %v330_v16 }
  0x2f   : > { %793 = vmatmul.msk.f32.vlgmr.msra.gmra.mxu2 %vm159_vm1, %v790_v13  ;;  %794 = vmatmul.msk.f32.vlgmr.msra.gmra.mxu3 %vm159_vm1, %v790_v13  ;;  %v795_v15 = vsel %vm244_vm2, 1.0, %v962_v12  ;;  %v800_v17 = vsel %vm331_vm3, 1.0, %v962_v12  ;;  %vm526_vm6 = vcmp.eq.s32.totalorder %v154_v18, %v524_v21  ;;  %vm525_vm7 = vcmp.eq.s32.totalorder %v1047_v2, %v524_v21 }
  0x30   : > { %305 = vmatpush.msrb.mxu2 %v146_v10  ;;  %325 = vmatpush.msrb.mxu3 %v148_v11  ;;  %vm613_vm8 = vcmp.eq.s32.totalorder %v154_v18, %v611_v28  ;;  %vm612_vm9 = vcmp.eq.s32.totalorder %v1047_v2, %v611_v28 }
  0x31   : > { %351 = vmatpush.msra.mxu0 %v143_v4  ;;  %371 = vmatpush.msra.mxu1 %v145_v5 }
  0x32   : > { %391 = vmatpush.msra.mxu2 %v147_v6  ;;  %411 = vmatpush.msra.mxu3 %v149_v7 }
  0x33   : > { %352 = vmatpush.msra.mxu0 %v142_v8  ;;  %372 = vmatpush.msra.mxu1 %v144_v9 }
  0x34   : > { %392 = vmatpush.msra.mxu2 %v146_v10  ;;  %412 = vmatpush.msra.mxu3 %v148_v11 }
  0x36   : > { %796 = vmatmul.msk.f32.vlgmr.msrb.gmra.mxu0 %vm159_vm1, %v795_v15  ;;  %797 = vmatmul.msk.f32.vlgmr.msrb.gmra.mxu1 %vm159_vm1, %v795_v15 }
  0x37   : > { %798 = vmatmul.msk.f32.vlgmr.msrb.gmra.mxu2 %vm159_vm1, %v795_v15  ;;  %799 = vmatmul.msk.f32.vlgmr.msrb.gmra.mxu3 %vm159_vm1, %v795_v15 }
  0x38   : > { %807 = vmatpush.msk.msrb.mxu0 %vm427_vm4, %v963_v20  ;;  %810 = vmatpush.msk.msrb.mxu1 %vm427_vm4, %v963_v20 }
  0x39   : > { %813 = vmatpush.msk.msrb.mxu2 %vm427_vm4, %v963_v20  ;;  %816 = vmatpush.msk.msrb.mxu3 %vm427_vm4, %v963_v20 }
  0x3a   : > { %808 = vmatpush.msk.msrb.mxu0 %vm426_vm5, %v963_v20  ;;  %811 = vmatpush.msk.msrb.mxu1 %vm426_vm5, %v963_v20 }
  0x3b   : > { %814 = vmatpush.msk.msrb.mxu2 %vm426_vm5, %v963_v20  ;;  %817 = vmatpush.msk.msrb.mxu3 %vm426_vm5, %v963_v20 }
  0x3e   : > { %801 = vmatmul.msk.f32.vlgmr.msra.gmra.mxu0 %vm159_vm1, %v800_v17  ;;  %802 = vmatmul.msk.f32.vlgmr.msra.gmra.mxu1 %vm159_vm1, %v800_v17 }
  0x3f   : > { %803 = vmatmul.msk.f32.vlgmr.msra.gmra.mxu2 %vm159_vm1, %v800_v17  ;;  %804 = vmatmul.msk.f32.vlgmr.msra.gmra.mxu3 %vm159_vm1, %v800_v17 }
  0x40   : > { %821 = vmatpush.msk.msra.mxu0 %vm526_vm6, %v963_v20  ;;  %824 = vmatpush.msk.msra.mxu1 %vm526_vm6, %v963_v20 }
  0x41   : > { %827 = vmatpush.msk.msra.mxu2 %vm526_vm6, %v963_v20  ;;  %830 = vmatpush.msk.msra.mxu3 %vm526_vm6, %v963_v20 }
  0x42   : > { %822 = vmatpush.msk.msra.mxu0 %vm525_vm7, %v963_v20  ;;  %825 = vmatpush.msk.msra.mxu1 %vm525_vm7, %v963_v20 }
  0x43   : > { %828 = vmatpush.msk.msra.mxu2 %vm525_vm7, %v963_v20  ;;  %831 = vmatpush.msk.msra.mxu3 %vm525_vm7, %v963_v20 }
  0xab   : > { %v180_v22 = vpop.f32.mrf.mxu0  ;;  %v200_v23 = vpop.f32.mrf.mxu1 }
  0xb2   : > { %v220_v24 = vpop.f32.mrf.mxu2  ;;  %v240_v25 = vpop.f32.mrf.mxu3 }
  0xb3   : > { %v267_v26 = vpop.f32.mrf.mxu0  ;;  %v287_v27 = vpop.f32.mrf.mxu1 }
  0xb4   : > { %v417_v29 = vmax.f32 %v180_v22, %v267_v26  ;;  %v418_v30 = vmax.f32 %v200_v23, %v287_v27 }
  0xba   : > { %v307_v31 = vpop.f32.mrf.mxu2  ;;  %v327_v32 = vpop.f32.mrf.mxu3 }
  0xbb   : > { %v354_v33 = vpop.f32.mrf.mxu0  ;;  %v374_v34 = vpop.f32.mrf.mxu1  ;;  %v419_v37 = vmax.f32 %v220_v24, %v307_v31  ;;  %v420_v38 = vmax.f32 %v240_v25, %v327_v32 }
  0xbc   : > { %v421_v35 = vmax.f32 %v417_v29, %v354_v33  ;;  %v422_v36 = vmax.f32 %v418_v30, %v374_v34 }
  0xbe   : > { %809 = vmatmul.msk.f32.vlgmr.msrb.gmra.mxu0 %vm159_vm1, %v421_v35  ;;  %812 = vmatmul.msk.f32.vlgmr.msrb.gmra.mxu1 %vm159_vm1, %v422_v36 }
  0xbf   : > { %835 = vmatpush.msk.msrb.mxu0 %vm613_vm8, %v963_v20  ;;  %838 = vmatpush.msk.msrb.mxu1 %vm613_vm8, %v963_v20 }
  0xc1   : > { %836 = vmatpush.msk.msrb.mxu0 %vm612_vm9, %v963_v20  ;;  %839 = vmatpush.msk.msrb.mxu1 %vm612_vm9, %v963_v20 }
  0xc2   : > { %v394_v39 = vpop.f32.mrf.mxu2  ;;  %v414_v40 = vpop.f32.mrf.mxu3 }
  0xc3   : > { %v423_v41 = vmax.f32 %v419_v37, %v394_v39  ;;  %v424_v42 = vmax.f32 %v420_v38, %v414_v40 }
  0xc5   : > { %815 = vmatmul.msk.f32.vlgmr.msrb.gmra.mxu2 %vm159_vm1, %v423_v41  ;;  %818 = vmatmul.msk.f32.vlgmr.msrb.gmra.mxu3 %vm159_vm1, %v424_v42 }
  0xc6   : > { %823 = vmatmul.msk.f32.vlgmr.msra.gmra.mxu0 %vm159_vm1, %v421_v35  ;;  %826 = vmatmul.msk.f32.vlgmr.msra.gmra.mxu1 %vm159_vm1, %v422_v36 }
  0xc7   : > { %841 = vmatpush.msk.msrb.mxu2 %vm613_vm8, %v963_v20  ;;  %844 = vmatpush.msk.msrb.mxu3 %vm613_vm8, %v963_v20 }
  0xc9   : > { %842 = vmatpush.msk.msrb.mxu2 %vm612_vm9, %v963_v20  ;;  %845 = vmatpush.msk.msrb.mxu3 %vm612_vm9, %v963_v20 }
  0xcd   : > { %829 = vmatmul.msk.f32.vlgmr.msra.gmra.mxu2 %vm159_vm1, %v423_v41  ;;  %832 = vmatmul.msk.f32.vlgmr.msra.gmra.mxu3 %vm159_vm1, %v424_v42 }
  0xce   : > { %837 = vmatmul.msk.f32.vlgmr.msrb.gmra.mxu0 %vm159_vm1, %v421_v35  ;;  %840 = vmatmul.msk.f32.vlgmr.msrb.gmra.mxu1 %vm159_vm1, %v422_v36 }
  0xd5   : > { %843 = vmatmul.msk.f32.vlgmr.msrb.gmra.mxu2 %vm159_vm1, %v423_v41  ;;  %846 = vmatmul.msk.f32.vlgmr.msrb.gmra.mxu3 %vm159_vm1, %v424_v42 }
 0x13b   : > { %v452_v43 = vpop.f32.mrf.mxu0  ;;  %v475_v44 = vpop.f32.mrf.mxu1 }
 0x143   : > { %v548_v45 = vpop.f32.mrf.mxu0  ;;  %v568_v46 = vpop.f32.mrf.mxu1 }
 0x144   : > { %v698_v49 = vmax.f32 %v452_v43, %v548_v45  ;;  %v699_v50 = vmax.f32 %v475_v44, %v568_v46 }
 0x148   : > { %v498_v47 = vpop.f32.mrf.mxu2  ;;  %v521_v48 = vpop.f32.mrf.mxu3 }
 0x14b   : > { %v635_v51 = vpop.f32.mrf.mxu0  ;;  %v655_v52 = vpop.f32.mrf.mxu1 }
 0x14c   : > { %v702_v53 = vmax.f32 %v698_v49, %v635_v51  ;;  %v703_v54 = vmax.f32 %v699_v50, %v655_v52 }
 0x14e   : > { %707 = vst.msk [vmem:[%s140_s22] sm:$0x1f] %vm706_vm10, %v702_v53 }
 0x14f   : > { %708 = vst.msk [vmem:[%s140_s22 + $0x8] sm:$0x1f] %vm706_vm10, %v703_v54 }
 0x150   : > { %v588_v55 = vpop.f32.mrf.mxu2  ;;  %v608_v56 = vpop.f32.mrf.mxu3 }
 0x151   : > { %v700_v57 = vmax.f32 %v498_v47, %v588_v55  ;;  %v701_v58 = vmax.f32 %v521_v48, %v608_v56 }
 0x158   : > { %v675_v59 = vpop.f32.mrf.mxu2  ;;  %v695_v60 = vpop.f32.mrf.mxu3 }
 0x159   : > { %v704_v61 = vmax.f32 %v700_v57, %v675_v59  ;;  %v705_v62 = vmax.f32 %v701_v58, %v695_v60 }
 0x15b   : > { %709 = vst.msk [vmem:[%s140_s22 + $0x10] sm:$0x1f] %vm706_vm10, %v704_v61 }
 0x15c   : > { %710 = vst.msk [vmem:[%s140_s22 + $0x18] sm:$0x1f] %vm706_vm10, %v705_v62 }
 0x15d PF: > { %p11_p7 = scmp.ge.s32.totalorder %s994_s11, 4   ;;  %s1113_s6 = smov %s950_s7 }
 0x15e   : > { %s1114_s7 = smov %s954_s8  ;;  %s1115_s8 = smov %s1004_s14 }
 0x15f   : > { %s1116_s9 = smov %s994_s11  ;;  %13 = sbr.rel (!%p11_p7) target bundleno = 3 (0x3), region = 64 }
 0x164   :  { %733 = vsyncpa [#allocation3], 1 }
 0x165   :  { %735 = vsyncpa [#allocation3 + $0x1], 1 }

</bundles_post_ra>
